<compile_context>
chip_gen: v6e
topology: v6e:2x2x1
jax: 0.10.0
libtpu: 0.0.40
codegen_flags: <defaults>
</compile_context>

<pallas_src>
import functools

import jax
import jax.numpy as jnp
from jax.experimental import pallas as pl
from jax.experimental.pallas import tpu as pltpu

LANES = 128
TR_MAX = 4096  # 4096 rows x 128 lanes x 4 B = 2 MiB per f32 input block


def _mse_partial_kernel(x_ref, t_ref, out_ref, acc_ref, *,
                        tr, total_rows, nblk, blocks_per_core, needs_mask):
    c = pl.program_id(0)  # core-split axis ("parallel")
    i = pl.program_id(1)  # reduction axis  ("arbitrary")

    @pl.when(i == 0)
    def _():
        acc_ref[...] = jnp.zeros_like(acc_ref)

    x = x_ref[...]
    t = t_ref[...]
    # Upcast in-kernel only if the inputs are not already f32 (e.g. bf16 maps).
    if x.dtype != jnp.float32:
        x = x.astype(jnp.float32)
        t = t.astype(jnp.float32)
    d = x - t

    if needs_mask:
        # Only the very last block of the whole reduction can be partial; all
        # other blocks take the unmasked (cheaper) path at runtime.
        blk = c * blocks_per_core + i
        is_last = blk == nblk - 1

        @pl.when(jnp.logical_not(is_last))
        def _():
            acc_ref[...] += jnp.sum(d * d, axis=0, keepdims=True)

        @pl.when(is_last)
        def _():
            row_ids = blk * tr + jax.lax.broadcasted_iota(
                jnp.int32, (tr, LANES), 0)
            dm = jnp.where(row_ids < total_rows, d, 0.0)
            acc_ref[...] += jnp.sum(dm * dm, axis=0, keepdims=True)
    else:
        acc_ref[...] += jnp.sum(d * d, axis=0, keepdims=True)

    @pl.when(i == pl.num_programs(1) - 1)
    def _():
        out_ref[0] = acc_ref[...]


def content_loss(inp: jax.Array, target: jax.Array) -> jax.Array:
    """MSE loss between `inp` and `target` (both NCHW), computed in Pallas."""
    assert inp.shape == target.shape, "mse_loss with identical shapes (as in module)"
    total_n = inp.size

    flat = inp.reshape(-1)
    tflat = target.reshape(-1)

    # Lane-tail fallback: only triggers when the element count isn't a multiple
    # of 128 (never for typical VGG feature maps). Padded zeros contribute 0.
    rem = flat.size % LANES
    if rem:
        pad = LANES - rem
        flat = jnp.pad(flat, (0, pad))
        tflat = jnp.pad(tflat, (0, pad))

    rows = flat.size // LANES
    x2d = flat.reshape(rows, LANES)
    t2d = tflat.reshape(rows, LANES)

    # Row-tile: large lane-dense blocks, sublane-aligned (multiple of 8).
    tr = min(TR_MAX, ((rows + 7) // 8) * 8)
    nblk = -(-rows // tr)  # cdiv
    needs_mask = (rows % tr) != 0

    # Split across 2 TensorCores (v7x megacore) when the block count divides
    # evenly; otherwise a single sequential reduction chain.
    nc = 2 if (nblk >= 2 and nblk % 2 == 0) else 1
    blocks_per_core = nblk // nc

    kernel = functools.partial(
        _mse_partial_kernel,
        tr=tr,
        total_rows=rows,
        nblk=nblk,
        blocks_per_core=blocks_per_core,
        needs_mask=needs_mask,
    )

    partials = pl.pallas_call(
        kernel,
        out_shape=jax.ShapeDtypeStruct((nc, 1, LANES), jnp.float32),
        grid_spec=pltpu.PrefetchScalarGridSpec(
            num_scalar_prefetch=0,
            grid=(nc, blocks_per_core),
            in_specs=[
                pl.BlockSpec((tr, LANES), lambda c, i: (c * blocks_per_core + i, 0)),
                pl.BlockSpec((tr, LANES), lambda c, i: (c * blocks_per_core + i, 0)),
            ],
            out_specs=pl.BlockSpec((1, 1, LANES), lambda c, i: (c, 0, 0)),
            scratch_shapes=[pltpu.VMEM((1, LANES), jnp.float32)],
        ),
        compiler_params=pltpu.CompilerParams(
            dimension_semantics=("parallel", "arbitrary"),
        ),
    )(x2d, t2d)

    # Single cross-lane reduce + divide, done once in the (tiny) JAX epilogue.
    return jnp.sum(partials) / jnp.float32(total_n)


if __name__ == "__main__":
    key = jax.random.PRNGKey(0)
    k1, k2, k3, k4 = jax.random.split(key, 4)

    # Small NCHW shape consistent with a VGG feature map.
    x = jax.random.normal(k1, (2, 4, 16, 16), dtype=jnp.float32)
    target = jax.random.normal(k2, (2, 4, 16, 16), dtype=jnp.float32)
    loss = content_loss(x, target)
    jax.block_until_ready(loss)
    ref = jnp.mean((x - target) ** 2)
    assert jnp.allclose(loss, ref, rtol=1e-5, atol=1e-6), (loss, ref)

    # Second check: VGG conv1-ish shape that exercises multi-block tiling,
    # the masked last block and the 2-core partial-sum path.
    x2 = jax.random.normal(k3, (1, 64, 112, 112), dtype=jnp.float32)
    t2 = jax.random.normal(k4, (1, 64, 112, 112), dtype=jnp.float32)
    loss2 = content_loss(x2, t2)
    jax.block_until_ready(loss2)
    ref2 = jnp.mean((x2 - t2) ** 2)
    assert jnp.allclose(loss2, ref2, rtol=1e-5, atol=1e-6), (loss2, ref2)

    print("KERNEL_OK")
</pallas_src>

<mosaic_0001>
module attributes {stable_mosaic.version = 11 : i64} {
  func.func @_mse_partial_kernel(%arg0: i32, %arg1: i32, %arg2: memref<16x128xf32, #tpu.memory_space<vmem>>, %arg3: memref<16x128xf32, #tpu.memory_space<vmem>>, %arg4: memref<1x1x128xf32, #tpu.memory_space<vmem>>, %arg5: memref<1x128xf32, #tpu.memory_space<vmem>>) attributes {dimension_semantics = [#tpu.dimension_semantics<parallel>, #tpu.dimension_semantics<arbitrary>], iteration_bounds = array<i64: 1, 1>, scalar_prefetch = 0 : i64, scratch_operands = 1 : i64, tpu.core_type = #tpu.core_type<tc>, window_params = [{transform_indices = @transform_0, window_bounds = array<i64: 16, 128>}, {transform_indices = @transform_1, window_bounds = array<i64: 16, 128>}, {transform_indices = @transform_2, window_bounds = array<i64: 1, 1, 128>}]} {
    %c0_i32 = arith.constant 0 : i32
    %0 = arith.cmpi eq, %arg1, %c0_i32 : i32
    %1 = arith.extui %0 : i1 to i32
    %c0_i32_0 = arith.constant 0 : i32
    %2 = arith.cmpi ne, %1, %c0_i32_0 : i32
    scf.if %2 {
      %cst_10 = arith.constant 0.000000e+00 : f32
      %15 = vector.broadcast %cst_10 : f32 to vector<1x128xf32>
      %c0_11 = arith.constant 0 : index
      %c0_12 = arith.constant 0 : index
      %16 = vector.load %arg5[%c0_11, %c0_12] : memref<1x128xf32, #tpu.memory_space<vmem>>, vector<1x128xf32>
      tpu.vector_store %arg5[%c0_11, %c0_12], %15 {strides = array<i32>} : memref<1x128xf32, #tpu.memory_space<vmem>>, vector<1x128xf32>,
    } else {
    }
    %c0 = arith.constant 0 : index
    %c0_1 = arith.constant 0 : index
    %3 = vector.load %arg2[%c0, %c0_1] : memref<16x128xf32, #tpu.memory_space<vmem>>, vector<16x128xf32>
    %c0_2 = arith.constant 0 : index
    %c0_3 = arith.constant 0 : index
    %4 = vector.load %arg3[%c0_2, %c0_3] : memref<16x128xf32, #tpu.memory_space<vmem>>, vector<16x128xf32>
    %5 = arith.subf %3, %4 : vector<16x128xf32>
    %c0_4 = arith.constant 0 : index
    %c0_5 = arith.constant 0 : index
    %6 = vector.load %arg5[%c0_4, %c0_5] : memref<1x128xf32, #tpu.memory_space<vmem>>, vector<1x128xf32>
    %7 = arith.mulf %5, %5 : vector<16x128xf32>
    %cst = arith.constant dense<0.000000e+00> : vector<128xf32>
    %8 = vector.multi_reduction <add>, %7, %cst [0] : vector<16x128xf32> to vector<128xf32>
    %9 = vector.shape_cast %8 : vector<128xf32> to vector<1x128xf32>
    %10 = arith.addf %6, %9 : vector<1x128xf32>
    %c0_6 = arith.constant 0 : index
    %c0_7 = arith.constant 0 : index
    %11 = vector.load %arg5[%c0_6, %c0_7] : memref<1x128xf32, #tpu.memory_space<vmem>>, vector<1x128xf32>
    tpu.vector_store %arg5[%c0_6, %c0_7], %10 {strides = array<i32>} : memref<1x128xf32, #tpu.memory_space<vmem>>, vector<1x128xf32>,
    %c0_i32_8 = arith.constant 0 : i32
    %12 = arith.cmpi eq, %arg1, %c0_i32_8 : i32
    %13 = arith.extui %12 : i1 to i32
    %c0_i32_9 = arith.constant 0 : i32
    %14 = arith.cmpi ne, %13, %c0_i32_9 : i32
    scf.if %14 {
      %c0_10 = arith.constant 0 : index
      %c0_11 = arith.constant 0 : index
      %15 = vector.load %arg5[%c0_10, %c0_11] : memref<1x128xf32, #tpu.memory_space<vmem>>, vector<1x128xf32>
      %c0_12 = arith.constant 0 : index
      %c0_13 = arith.constant 0 : index
      %c0_14 = arith.constant 0 : index
      %16 = vector.load %arg4[%c0_12, %c0_13, %c0_14] : memref<1x1x128xf32, #tpu.memory_space<vmem>>, vector<1x1x128xf32>
      %17 = vector.shape_cast %16 : vector<1x1x128xf32> to vector<1x128xf32>
      %18 = vector.shape_cast %15 : vector<1x128xf32> to vector<1x1x128xf32>
      tpu.vector_store %arg4[%c0_12, %c0_13, %c0_14], %18 {strides = array<i32>} : memref<1x1x128xf32, #tpu.memory_space<vmem>>, vector<1x1x128xf32>,
    } else {
    }
    return
  }
  func.func @transform_0(%arg0: i32, %arg1: i32) -> (i32, i32) {
    %c1_i32 = arith.constant 1 : i32
    %0 = arith.muli %arg0, %c1_i32 : i32
    %1 = arith.addi %0, %arg1 : i32
    %c0_i32 = arith.constant 0 : i32
    %c0_i32_0 = arith.constant 0 : i32
    return %1, %c0_i32 : i32, i32
  }
  func.func @transform_1(%arg0: i32, %arg1: i32) -> (i32, i32) {
    %c1_i32 = arith.constant 1 : i32
    %0 = arith.muli %arg0, %c1_i32 : i32
    %1 = arith.addi %0, %arg1 : i32
    %c0_i32 = arith.constant 0 : i32
    %c0_i32_0 = arith.constant 0 : i32
    return %1, %c0_i32 : i32, i32
  }
  func.func @transform_2(%arg0: i32, %arg1: i32) -> (i32, i32, i32) {
    %c0_i32 = arith.constant 0 : i32
    %c0_i32_0 = arith.constant 0 : i32
    %c0_i32_1 = arith.constant 0 : i32
    return %arg0, %c0_i32, %c0_i32_0 : i32, i32, i32
  }
}

</mosaic_0001>

<bundles_post_ra>
// kernel: tpu_custom_call.1
= control target key start
LH: loop header
LB: loop body
LE: loop exit
PB: predicated region body
PF: predicated region fallthrough
CT: control target
= control target key end

     0   :  { %7 = vsyncpa [#allocation4], 0  ;;  %s198_s0 = inlined_call_operand.hbm [shape: f32[16,128], index: 0, kind: input, shape index: {}]   ;;  %s199_s1 = inlined_call_operand.hbm [shape: f32[16,128], index: 1, kind: input, shape index: {}]   ;;  %s200_s2 = inlined_call_operand.hbm [shape: f32[1,1,128], index: 2, kind: output, shape index: {}]  }
   0x1   :  { %8 = vsyncpa [#allocation7], 0 }
   0x2   :  { %9 = vsyncpa [#allocation5], 0  ;;  %s168_s9 = smov [#allocation3]  }
   0x3   :  { %s19_s10 = sshll.u32 %s168_s9, 4  ;;  %s20_s10 = int_to_ptr.vmem [resolvable:$true] %s19_s10 }
   0x4   :  { %s110_s11 = scalar_lea.vmem %s20_s10, 256  ;;  %p115_p1 = scmp.lt.s32.totalorder %s20_s10, %s20_s10 }
   0x5   :  { %p111_p0 = scmp.ne.s32.totalorder %s20_s10, %s110_s11  ;;  %p116_p2 = scmp.lt.s32.totalorder %s110_s11, %s110_s11 }
   0x7   :  { %p117_p3 = por %p116_p2, %p115_p1 }
   0x9   :  { %p118_p4 = pnand %p117_p3, %p111_p0 }
   0xb   :  { %121 = shalt.err (!%p118_p4)
}
   0xc   :  { %s169_s12 = smov 128   ;;  %s170_s13 = smov 8  }
   0xd   :  { %25 = dma.hbm_to_vmem [thread:$0]  %s198_s0, 256, %s20_s10, [#allocation4], %s169_s12, %s169_s12, %s170_s13  }
   0xe   :  { %s171_s16 = smov [#allocation6]  }
   0xf   :  { %s35_s17 = sshll.u32 %s171_s16, 4  ;;  %s36_s17 = int_to_ptr.vmem [resolvable:$true] %s35_s17 }
  0x10   :  { %s130_s18 = scalar_lea.vmem %s36_s17, 256  ;;  %p135_p6 = scmp.lt.s32.totalorder %s36_s17, %s36_s17 }
  0x11   :  { %p131_p5 = scmp.ne.s32.totalorder %s36_s17, %s130_s18  ;;  %p136_p7 = scmp.lt.s32.totalorder %s130_s18, %s130_s18 }
  0x13   :  { %p137_p8 = por %p136_p7, %p135_p6 }
  0x15   :  { %p138_p9 = pnand %p137_p8, %p131_p5 }
  0x17   :  { %141 = shalt.err (!%p138_p9)
}
  0x18   :  { %41 = dma.hbm_to_vmem [thread:$0]  %s199_s1, 256, %s36_s17, [#allocation7], %s169_s12, %s169_s12, %s170_s13  }
  0x19   :  { %162 = dma.done.wait [#allocation4], 256  }
  0x1a   :  { %163 = vsyncadd [#allocation4], 4294967040 }
  0x1b   :  { %164 = dma.done.wait [#allocation7], 256  }
  0x1c   :  { %165 = vsyncadd [#allocation7], 4294967040  ;;  %v172_v0 = vmov 0.0   ;;  %v57_v1 = vld [vmem:[#allocation3] sm:$0xff]  ;;  %v58_v2 = vld [vmem:[#allocation3 + $0x8] sm:$0xff]  ;;  %s173_s0 = smov [#allocation8]  }
  0x1d   :  { %56 = vst [vmem:[#allocation2] sm:$0x1] %v172_v0  ;;  %v59_v3 = vld [vmem:[#allocation6] sm:$0xff]  ;;  %v60_v4 = vld [vmem:[#allocation6 + $0x8] sm:$0xff]  ;;  %s86_s1 = sshll.u32 %s173_s0, 4  ;;  %s87_s1 = int_to_ptr.vmem [resolvable:$true] %s86_s1 }
  0x1e   :  { %v61_v5 = vsub.f32 %v57_v1, %v59_v3  ;;  %v62_v6 = vsub.f32 %v58_v2, %v60_v4  ;;  %s142_s21 = scalar_lea.vmem %s87_s1, 16  ;;  %s146_s22 = scalar_lea.vmem %s87_s1, 32 }
  0x1f   :  { %p143_p10 = scmp.ne.s32.totalorder %s87_s1, %s142_s21  ;;  %p147_p11 = scmp.lt.s32.totalorder %s87_s1, %s87_s1 }
  0x20   :  { %v64_v7 = vmul.f32 %v61_v5, %v61_v5  ;;  %v65_v8 = vmul.f32 %v62_v6, %v62_v6  ;;  %p148_p12 = scmp.lt.s32.totalorder %s146_s22, %s142_s21 }
  0x22   :  { %v66_v9 = vadd.f32 %v65_v8, %v64_v7  ;;  %p149_p13 = por %p148_p12, %p147_p11 }
  0x24   :  { %v67_v10 = vrot.slane %v66_v9, 4  ;;  %v63_v15 = vld [vmem:[#allocation2] sm:$0x1]  ;;  %p150_p0 = pnand %p149_p13, %p143_p10 }
  0x26   :  { %v68_v11 = vadd.f32 %v67_v10, %v66_v9 }
  0x28   :  { %v69_v12 = vrot.slane %v68_v11, 2 }
  0x2a   :  { %v70_v13 = vadd.f32 %v69_v12, %v68_v11 }
  0x2c   :  { %v71_v14 = vrot.slane %v70_v13, 1 }
  0x2e   :  { %v72_v16 = vadd.f32 %v71_v14, %v70_v13 }
  0x30   :  { %v73_v17 = vadd.f32 %v72_v16, %v63_v15 }
  0x32   :  { %74 = vst [vmem:[#allocation2] sm:$0x1] %v73_v17 }
  0x39   :  { %v78_v18 = vld [vmem:[#allocation2] sm:$0x1] }
  0x3a   :  { %79 = vst [vmem:[#allocation8] sm:$0x1] %v78_v18 }
  0x3b   :  { %153 = shalt.err (!%p150_p0)
}
  0x3c   :  { %89 = dma.vmem_to_hbm [thread:$0]  %s87_s1, 16, %s200_s2, [#allocation5]  }
  0x3d   :  { %166 = dma.done.wait [#allocation5], 16  }
  0x3e   :  { %167 = vsyncadd [#allocation5], 4294967280 }
  0x3f   :  { %93 = vsyncpa [#allocation4], 1 }
  0x40   :  { %94 = vsyncpa [#allocation7], 1 }
  0x41   :  { %95 = vsyncpa [#allocation5], 1 }

</bundles_post_ra>
